<compile_context>
chip_gen: v5e
topology: v5e:2x2
jax: 0.10.0
libtpu: 0.0.40
codegen_flags: <defaults>
</compile_context>

<pallas_src>
import jax
import jax.numpy as jnp
from jax.experimental import pallas as pl
from jax.experimental.pallas import tpu as pltpu


def _round_up(x, m):
    return (x + m - 1) // m * m


def _vmem_capacity_bytes():
    """Best-effort query of per-core VMEM capacity (fallback: 128 MiB)."""
    try:
        return int(pltpu.get_tpu_info().vmem_capacity_bytes)
    except Exception:
        return 128 * 1024 * 1024


def mlp_kernel(x_ref, wgu_ref, wd_ref, o_ref, acc_ref):
    # x_ref:   (tm, D)       token-row tile (constant along the F grid axis)
    # wgu_ref: (D, 2*tf)     fused [gate_f | up_f] weight tile for this F slice
    # wd_ref:  (tf, D)       down_proj weight tile for this F slice
    # o_ref:   (tm, D)       output tile (written once, on the last F step)
    # acc_ref: (tm, D) f32   VMEM accumulator, resident across the F axis
    f = pl.program_id(1)
    tf = wd_ref.shape[0]

    x = x_ref[...]
    # One fused MXU matmul for gate+up: (tm, D) @ (D, 2*tf) -> (tm, 2*tf) f32
    gu = jnp.dot(x, wgu_ref[...], preferred_element_type=jnp.float32)
    g = gu[:, :tf]
    u = gu[:, tf:]
    h = (g * jax.nn.sigmoid(g)) * u               # SiLU(g) * u in f32
    partial = jnp.dot(h.astype(x.dtype), wd_ref[...],
                      preferred_element_type=jnp.float32)

    # Initialize with the first partial product (saves a zero write + read of
    # the full f32 accumulator per row tile).
    @pl.when(f == 0)
    def _():
        acc_ref[...] = partial

    @pl.when(f > 0)
    def _():
        acc_ref[...] += partial

    @pl.when(f == pl.num_programs(1) - 1)
    def _():
        o_ref[...] = acc_ref[...].astype(o_ref.dtype)


def prepare_weights(w_gate, w_up, w_down, *, tf=None, param_dtype=jnp.bfloat16):
    """One-time re-layout + bf16 cast of PyTorch nn.Linear weights.

    w_gate, w_up: [F, D]; w_down: [D, F]   ([out_features, in_features]).
    Returns (w_gu, w_dn, tf_eff):
      w_gu: [D, 2*F_pad] param_dtype, per-F-tile columns arranged [gate_f|up_f]
      w_dn: [F_pad, D]   param_dtype
    Zero-padding of F is exact: silu(0)*0 == 0 and zero down-proj rows add 0.
    """
    F_, D = w_gate.shape

    if tf is None:
        # v7x has 64 MiB/TC VMEM -> use the smaller F tile there; v5e/v6e have
        # 128 MiB -> tf=512 keeps grid-step count (and per-step overhead) low.
        tf = 256 if _vmem_capacity_bytes() <= 64 * 1024 * 1024 else 512

    if F_ <= tf:
        tf_eff = F_            # single F tile: block == full dims
        F_pad = F_
    else:
        assert tf % 128 == 0, "tf must be a multiple of 128 when F is tiled"
        tf_eff = tf
        F_pad = _round_up(F_, tf_eff)

    pad = F_pad - F_
    wg_t = jnp.pad(w_gate, ((0, pad), (0, 0))).T.astype(param_dtype)  # [D, F_pad]
    wu_t = jnp.pad(w_up,   ((0, pad), (0, 0))).T.astype(param_dtype)  # [D, F_pad]
    wd_t = jnp.pad(w_down, ((0, 0), (0, pad))).T.astype(param_dtype)  # [F_pad, D]

    n_f = F_pad // tf_eff
    w_gu = jnp.concatenate(
        [wg_t.reshape(D, n_f, 1, tf_eff), wu_t.reshape(D, n_f, 1, tf_eff)],
        axis=2,
    ).reshape(D, 2 * F_pad)
    return w_gu, wd_t, tf_eff


def mlp_forward(x, w_gu, w_dn, tf, *, tm=512):
    """x: [B, T, D]; w_gu: [D, 2*F_pad]; w_dn: [F_pad, D] (from prepare_weights).

    Compute dtype follows the weights (bf16 by default); accumulation is f32;
    output is returned in x's original dtype.  tm defaults to 512 so the
    streamed-weight arithmetic intensity (== tm FLOPs/byte) clears the
    compute-bound threshold on v5e (~240), v7x (~310) and v6e (~640-ish).
    On v5e keep tm/tf multiples of 128; on v6e/v7x multiples of 256.
    """
    B, T, D = x.shape
    F_pad = w_dn.shape[0]
    assert F_pad % tf == 0
    n_f = F_pad // tf
    M = B * T

    compute_dtype = w_gu.dtype
    out_dtype = x.dtype
    itemsize = jnp.dtype(compute_dtype).itemsize
    row_align = 16 if itemsize == 2 else 8        # bf16 sublane packing

    tm_eff = min(tm, _round_up(M, row_align))
    M_pad = _round_up(M, tm_eff)
    # v7x has 2 TensorCores and only the "parallel" M axis is sharded across
    # them: if everything fits in one row tile, split it in two.
    if M_pad // tm_eff == 1 and M > row_align:
        tm_eff = _round_up(-(-M // 2), row_align)
        M_pad = _round_up(M, tm_eff)

    x2 = x.reshape(M, D).astype(compute_dtype)
    if M_pad != M:
        x2 = jnp.pad(x2, ((0, M_pad - M), (0, 0)))

    # VMEM budget derived from the actual tile footprint (double-buffered
    # streamed weights + x/out tiles + f32 accumulator + headroom), capped at
    # ~90% of the chip's physical VMEM (64 MiB/TC on v7x, 128 MiB on v5e/v6e).
    weight_bytes = 2 * (D * 2 * tf + tf * D) * itemsize
    xo_bytes = 2 * tm_eff * D * (itemsize + jnp.dtype(out_dtype).itemsize)
    acc_bytes = tm_eff * D * 4
    budget = weight_bytes + xo_bytes + acc_bytes + (8 << 20)
    vmem_cap = _vmem_capacity_bytes()
    vmem_limit = max(32 << 20, min(int(budget), int(0.9 * vmem_cap)))

    out = pl.pallas_call(
        mlp_kernel,
        out_shape=jax.ShapeDtypeStruct((M_pad, D), out_dtype),
        grid_spec=pltpu.PrefetchScalarGridSpec(
            num_scalar_prefetch=0,
            grid=(M_pad // tm_eff, n_f),            # F is the inner reduction axis
            in_specs=[
                pl.BlockSpec((tm_eff, D), lambda i, f: (i, 0)),     # x rows
                pl.BlockSpec((D, 2 * tf), lambda i, f: (0, f)),     # [gate|up] tile
                pl.BlockSpec((tf, D), lambda i, f: (f, 0)),         # down tile
            ],
            out_specs=pl.BlockSpec((tm_eff, D), lambda i, f: (i, 0)),
            scratch_shapes=[pltpu.VMEM((tm_eff, D), jnp.float32)],  # accumulator
        ),
        compiler_params=pltpu.CompilerParams(
            # M axis shards across TensorCores (v7x megacore); F is a reduction.
            dimension_semantics=("parallel", "arbitrary"),
            vmem_limit_bytes=vmem_limit,
        ),
    )(x2, w_gu, w_dn)

    if M_pad != M:
        out = out[:M]
    return out.reshape(B, T, D)


def reference_mlp(x, w_gate, w_up, w_down):
    g = jnp.einsum("btd,fd->btf", x, w_gate)
    u = jnp.einsum("btd,fd->btf", x, w_up)
    h = jax.nn.silu(g) * u
    return jnp.einsum("btf,df->btd", h, w_down)


if __name__ == "__main__":
    # Small config consistent with the module: n_embd=32, intermediate_size=64
    B, T, D, F_ = 2, 8, 32, 64
    key = jax.random.PRNGKey(0)
    kx, kg, ku, kd = jax.random.split(key, 4)

    x = jax.random.normal(kx, (B, T, D), dtype=jnp.float32)
    # "nn.Linear"-layout weights: [out_features, in_features]
    w_gate = jax.random.normal(kg, (F_, D), dtype=jnp.float32) * 0.05
    w_up = jax.random.normal(ku, (F_, D), dtype=jnp.float32) * 0.05
    w_down = jax.random.normal(kd, (D, F_), dtype=jnp.float32) * 0.05

    # One-time weight re-layout + bf16 cast (cache alongside params in a model).
    w_gu, w_dn, tf = prepare_weights(w_gate, w_up, w_down)

    y = mlp_forward(x, w_gu, w_dn, tf)
    jax.block_until_ready(y)

    # Reference in f32; tolerance loosened because the kernel computes in bf16
    # (f32 accumulation).
    y_ref = reference_mlp(x, w_gate, w_up, w_down)
    assert y.shape == (B, T, D)
    assert jnp.allclose(y, y_ref, atol=2e-2, rtol=2e-2), "mismatch vs reference"

    print("KERNEL_OK")
</pallas_src>

<mosaic_0001>
module attributes {stable_mosaic.version = 11 : i64} {
  func.func @mlp_kernel(%arg0: i32, %arg1: i32, %arg2: memref<16x32xbf16, #tpu.memory_space<vmem>>, %arg3: memref<32x128xbf16, #tpu.memory_space<vmem>>, %arg4: memref<64x32xbf16, #tpu.memory_space<vmem>>, %arg5: memref<16x32xf32, #tpu.memory_space<vmem>>, %arg6: memref<16x32xf32, #tpu.memory_space<vmem>>) attributes {dimension_semantics = [#tpu.dimension_semantics<parallel>, #tpu.dimension_semantics<arbitrary>], iteration_bounds = array<i64: 1, 1>, scalar_prefetch = 0 : i64, scratch_operands = 1 : i64, tpu.core_type = #tpu.core_type<tc>, window_params = [{transform_indices = @transform_0, window_bounds = array<i64: 16, 32>}, {transform_indices = @transform_1, window_bounds = array<i64: 32, 128>}, {transform_indices = @transform_2, window_bounds = array<i64: 64, 32>}, {transform_indices = @transform_3, window_bounds = array<i64: 16, 32>}]} {
    %c0 = arith.constant 0 : index
    %c0_0 = arith.constant 0 : index
    %0 = vector.load %arg2[%c0, %c0_0] : memref<16x32xbf16, #tpu.memory_space<vmem>>, vector<16x32xbf16>
    %c0_1 = arith.constant 0 : index
    %c0_2 = arith.constant 0 : index
    %1 = vector.load %arg3[%c0_1, %c0_2] : memref<32x128xbf16, #tpu.memory_space<vmem>>, vector<32x128xbf16>
    %cst = arith.constant dense<0.000000e+00> : vector<16x128xf32>
    %2 = tpu.matmul %0, %1, %cst {dimension_numbers = #tpu.dot_dimension_numbers<[1], [0], [0], [1], [0, 0, 1, 1], [], []>} : vector<16x32xbf16>, vector<32x128xbf16>, vector<16x128xf32> -> vector<16x128xf32>
    %3 = vector.extract_strided_slice %2 {offsets = [0, 0], sizes = [16, 64], strides = [1, 1]} : vector<16x128xf32> to vector<16x64xf32>
    %4 = vector.extract_strided_slice %2 {offsets = [0, 64], sizes = [16, 64], strides = [1, 1]} : vector<16x128xf32> to vector<16x64xf32>
    %5 = arith.negf %3 : vector<16x64xf32>
    %6 = math.exp %5 : vector<16x64xf32>
    %cst_3 = arith.constant 1.000000e+00 : f32
    %7 = vector.broadcast %cst_3 : f32 to vector<16x64xf32>
    %8 = arith.addf %7, %6 : vector<16x64xf32>
    %9 = arith.divf %7, %8 : vector<16x64xf32>
    %10 = arith.mulf %3, %9 : vector<16x64xf32>
    %11 = arith.mulf %10, %4 : vector<16x64xf32>
    %12 = arith.truncf %11 : vector<16x64xf32> to vector<16x64xbf16>
    %c0_4 = arith.constant 0 : index
    %c0_5 = arith.constant 0 : index
    %13 = vector.load %arg4[%c0_4, %c0_5] : memref<64x32xbf16, #tpu.memory_space<vmem>>, vector<64x32xbf16>
    %cst_6 = arith.constant dense<0.000000e+00> : vector<16x32xf32>
    %14 = tpu.matmul %12, %13, %cst_6 {dimension_numbers = #tpu.dot_dimension_numbers<[1], [0], [0], [1], [0, 0, 1, 1], [], []>} : vector<16x64xbf16>, vector<64x32xbf16>, vector<16x32xf32> -> vector<16x32xf32>
    %c0_i32 = arith.constant 0 : i32
    %15 = arith.cmpi eq, %arg1, %c0_i32 : i32
    %16 = arith.extui %15 : i1 to i32
    %c0_i32_7 = arith.constant 0 : i32
    %17 = arith.cmpi ne, %16, %c0_i32_7 : i32
    scf.if %17 {
      %c0_12 = arith.constant 0 : index
      %c0_13 = arith.constant 0 : index
      %24 = vector.load %arg6[%c0_12, %c0_13] : memref<16x32xf32, #tpu.memory_space<vmem>>, vector<16x32xf32>
      tpu.vector_store %arg6[%c0_12, %c0_13], %14 {strides = array<i32>} : memref<16x32xf32, #tpu.memory_space<vmem>>, vector<16x32xf32>,
    } else {
    }
    %c0_i32_8 = arith.constant 0 : i32
    %18 = arith.cmpi sgt, %arg1, %c0_i32_8 : i32
    %19 = arith.extui %18 : i1 to i32
    %c0_i32_9 = arith.constant 0 : i32
    %20 = arith.cmpi ne, %19, %c0_i32_9 : i32
    scf.if %20 {
      %c0_12 = arith.constant 0 : index
      %c0_13 = arith.constant 0 : index
      %24 = vector.load %arg6[%c0_12, %c0_13] : memref<16x32xf32, #tpu.memory_space<vmem>>, vector<16x32xf32>
      %25 = arith.addf %24, %14 : vector<16x32xf32>
      %c0_14 = arith.constant 0 : index
      %c0_15 = arith.constant 0 : index
      %26 = vector.load %arg6[%c0_14, %c0_15] : memref<16x32xf32, #tpu.memory_space<vmem>>, vector<16x32xf32>
      tpu.vector_store %arg6[%c0_14, %c0_15], %25 {strides = array<i32>} : memref<16x32xf32, #tpu.memory_space<vmem>>, vector<16x32xf32>,
    } else {
    }
    %c0_i32_10 = arith.constant 0 : i32
    %21 = arith.cmpi eq, %arg1, %c0_i32_10 : i32
    %22 = arith.extui %21 : i1 to i32
    %c0_i32_11 = arith.constant 0 : i32
    %23 = arith.cmpi ne, %22, %c0_i32_11 : i32
    scf.if %23 {
      %c0_12 = arith.constant 0 : index
      %c0_13 = arith.constant 0 : index
      %24 = vector.load %arg6[%c0_12, %c0_13] : memref<16x32xf32, #tpu.memory_space<vmem>>, vector<16x32xf32>
      %c0_14 = arith.constant 0 : index
      %c0_15 = arith.constant 0 : index
      %25 = vector.load %arg5[%c0_14, %c0_15] : memref<16x32xf32, #tpu.memory_space<vmem>>, vector<16x32xf32>
      tpu.vector_store %arg5[%c0_14, %c0_15], %24 {strides = array<i32>} : memref<16x32xf32, #tpu.memory_space<vmem>>, vector<16x32xf32>,
    } else {
    }
    return
  }
  func.func @transform_0(%arg0: i32, %arg1: i32) -> (i32, i32) {
    %c0_i32 = arith.constant 0 : i32
    %c0_i32_0 = arith.constant 0 : i32
    return %arg0, %c0_i32 : i32, i32
  }
  func.func @transform_1(%arg0: i32, %arg1: i32) -> (i32, i32) {
    %c0_i32 = arith.constant 0 : i32
    %c0_i32_0 = arith.constant 0 : i32
    return %c0_i32, %arg1 : i32, i32
  }
  func.func @transform_2(%arg0: i32, %arg1: i32) -> (i32, i32) {
    %c0_i32 = arith.constant 0 : i32
    %c0_i32_0 = arith.constant 0 : i32
    return %arg1, %c0_i32 : i32, i32
  }
  func.func @transform_3(%arg0: i32, %arg1: i32) -> (i32, i32) {
    %c0_i32 = arith.constant 0 : i32
    %c0_i32_0 = arith.constant 0 : i32
    return %arg0, %c0_i32 : i32, i32
  }
}

</mosaic_0001>

<bundles_post_ra>
// kernel: tpu_custom_call.1
= control target key start
LH: loop header
LB: loop body
LE: loop exit
PB: predicated region body
PF: predicated region fallthrough
CT: control target
= control target key end

     0   :  { %s329_s0 = inlined_call_operand.vmem [shape: bf16[16,32], index: 0, kind: input, shape index: {}]   ;;  %s330_s1 = inlined_call_operand.vmem [shape: bf16[32,128], index: 1, kind: input, shape index: {}]   ;;  %s331_s2 = inlined_call_operand.vmem [shape: bf16[64,32], index: 2, kind: input, shape index: {}]   ;;  %s332_s3 = inlined_call_operand.hbm [shape: f32[16,32], index: 3, kind: output, shape index: {}]  }
   0x1   :  { %v233_v0 = vld [vmem:[%s330_s1 + $0x8] sm:$0xff] }
   0x2   :  { %8 = vsyncpa [#allocation4], 0  ;;  %49 = vmatpush.bf16.msra.mxu0 %v233_v0  ;;  %v232_v1 = vld [vmem:[%s330_s1] sm:$0xff]  ;;  %vm39_vm0 = vcmask 261120   ;;  %s276_s18 = smov 64   ;;  %v237_v4 = vld [vmem:[%s331_s2 + $0x18] sm:$0xff] }
   0x3   :  { %v231_v2 = vld [vmem:[%s329_s0] sm:$0xff]  ;;  %148 = vmatpush.bf16.msra.mxu1 %v237_v4  ;;  %v236_v9 = vld [vmem:[%s331_s2 + $0x10] sm:$0xff]  ;;  %v235_v11 = vld [vmem:[%s331_s2 + $0x8] sm:$0xff]  ;;  %vm140_vm9 = vcmask 523264   ;;  %s187_s28 = sshll.u32 %s332_s3, 4  ;;  %s278_s29 = smov 128   ;;  %s188_s28 = int_to_ptr.hbm [resolvable:$true] %s187_s28 }
   0x4   :  { %v234_v14 = vld [vmem:[%s331_s2] sm:$0xff]  ;;  %s277_s2 = smov [#allocation3]   ;;  %s279_s30 = smov 8  }
   0x5   :  { %s185_s25 = sshll.u32 %s277_s2, 4  ;;  %s186_s25 = int_to_ptr.vmem [resolvable:$true] %s185_s25 }
   0x6   :  { %50 = vmatpush.bf16.msra.mxu0 %v232_v1 }
   0x7   :  { %149 = vmatpush.bf16.msra.mxu1 %v236_v9 }
   0x9   :  { %211 = vmatmul.msk.bf16.vlgmr.msra.gmra.mxu0 %vm39_vm0, %v231_v2 }
   0xb   :  { %150 = vmatpush.bf16.msra.mxu1 %v235_v11 }
   0xf   :  { %151 = vmatpush.bf16.msra.mxu1 %v234_v14 }
  0x86   :  { %v52_v3 = vpop.f32.mrf.mxu0 }
  0x87   :  { %99 = vrot.lane.b32.xlu0 %v52_v3, %s276_s18  ;;  %v212_v6 = vmul.f32 -1.442695, %v52_v3 }
  0x89   :  { %242 = vpow2.f32 %v212_v6 }
  0x8e   :  { %v54_v5 = vpop.f32.mrf.mxu0 }
  0x8f   :  { %101 = vrot.lane.b32.xlu0 %v54_v5, %s276_s18  ;;  %v213_v7 = vmul.f32 -1.442695, %v54_v5  ;;  %v243_v8 = vpop.eup %242 }
  0x90   :  { %v63_v12 = vadd.f32 1.0, %v243_v8 }
  0x91   :  { %244 = vpow2.f32 %v213_v7 }
  0x92   :  { %246 = vrcp.f32 %v63_v12  ;;  %vm70_vm3 = vweird.f32 %v63_v12  ;;  %v76_v26 = vand.u32 2147483648, %v63_v12  ;;  %v74_v28 = vand.u32 2147483647, %v63_v12 }
  0x94   :  { %v77_v33 = vor.u32 1.1754944e-38, %v76_v26  ;;  %vm75_vm8 = vcmp.eq.f32.partialorder %v74_v28, 8.507059e+37 }
  0x97   :  { %v245_v10 = vpop.eup %244 }
  0x98   :  { %v64_v13 = vadd.f32 1.0, %v245_v10  ;;  %v247_v15 = vpop.eup %246 }
  0x99   :  { %v66_v18 = vmul.f32 %v247_v15, %v63_v12  ;;  %vm71_vm1 = vweird.f32 %v247_v15 }
  0x9a   :  { %248 = vrcp.f32 %v64_v13  ;;  %v91_v25 = vand.u32 2147483648, %v64_v13  ;;  %vm85_vm4 = vweird.f32 %v64_v13  ;;  %v89_v27 = vand.u32 2147483647, %v64_v13  ;;  %vm72_vm5 = vmor %vm70_vm3, %vm71_vm1 }
  0x9b   :  { %v67_v20 = vsub.f32 1.0, %v66_v18 }
  0x9c   :  { %v92_v32 = vor.u32 1.1754944e-38, %v91_v25  ;;  %vm90_vm7 = vcmp.eq.f32.partialorder %v89_v27, 8.507059e+37 }
  0x9d   :  { %v68_v22 = vmul.f32 %v247_v15, %v67_v20 }
  0x9f   :  { %v69_v24 = vadd.f32 %v247_v15, %v68_v22 }
  0xa0   :  { %v249_v16 = vpop.eup %248 }
  0xa1   :  { %v81_v17 = vmul.f32 %v249_v16, %v64_v13  ;;  %vm86_vm2 = vweird.f32 %v249_v16  ;;  %v73_v31 = vsel %vm72_vm5, %v247_v15, %v69_v24 }
  0xa2   :  { %vm87_vm6 = vmor %vm85_vm4, %vm86_vm2  ;;  %v78_v35 = vsel %vm75_vm8, %v77_v33, %v73_v31 }
  0xa3   :  { %v82_v19 = vsub.f32 1.0, %v81_v17  ;;  %v95_v37 = vmul.f32 %v78_v35, %v52_v3 }
  0xa5   :  { %v83_v21 = vmul.f32 %v249_v16, %v82_v19 }
  0xa7   :  { %v84_v23 = vadd.f32 %v249_v16, %v83_v21 }
  0xa9   :  { %v88_v30 = vsel %vm87_vm6, %v249_v16, %v84_v23 }
  0xaa   :  { %v93_v34 = vsel %vm90_vm7, %v92_v32, %v88_v30 }
  0xab   :  { %v96_v36 = vmul.f32 %v93_v34, %v54_v5 }
  0xf9   :  { %v100_v29 = vpop.permute.xlu0 %99 }
  0xfa   :  { %v105_v39 = vmul.f32 %v100_v29, %v95_v37 }
 0x101   :  { %v102_v38 = vpop.permute.xlu0 %101 }
 0x102   :  { %v106_v40 = vmul.f32 %v102_v38, %v96_v36 }
 0x104   :  { %v107_v41 = vpack.c.bf16 %v106_v40, %v105_v39 }
 0x106   :  { %230 = vmatmul.msk.bf16.vlgmr.msra.gmra.mxu1 %vm140_vm9, %v107_v41 }
 0x183   :  { %v153_v42 = vpop.f32.mrf.mxu1 }
 0x184   :  { %162 = vst.msk [vmem:[#allocation2] sm:$0xff] %vm39_vm0, %v153_v42 }
 0x18b   :  { %v155_v43 = vpop.f32.mrf.mxu1  ;;  %v177_v44 = vld [vmem:[#allocation2] sm:$0xff] }
 0x18c   :  { %163 = vst.msk [vmem:[#allocation2 + $0x8] sm:$0xff] %vm39_vm0, %v155_v43 }
 0x18d   :  { %179 = vst.msk [vmem:[#allocation3] sm:$0xff] %vm39_vm0, %v177_v44 }
 0x193   :  { %v178_v45 = vld [vmem:[#allocation2 + $0x8] sm:$0xff] }
 0x194   :  { %180 = vst.msk [vmem:[#allocation3 + $0x8] sm:$0xff] %vm39_vm0, %v178_v45 }
 0x195   :  { %193 = dma.vmem_to_hbm [thread:$0]  %s186_s25, 256, %s188_s28, [#allocation4], %s278_s29, %s278_s29, %s279_s30  }
 0x196   :  { %274 = dma.done.wait [#allocation4], 256  }
 0x197   :  { %275 = vsyncadd [#allocation4], 4294967040 }
 0x198   :  { %198 = vsyncpa [#allocation4], 1 }

</bundles_post_ra>
